<compile_context>
chip_gen: v5e
topology: v5e:2x2
jax: 0.10.0
libtpu: 0.0.40
codegen_flags: <defaults>
</compile_context>

<pallas_src>
import math

import jax
import jax.numpy as jnp
from jax.experimental import pallas as pl
from jax.experimental.pallas import tpu as pltpu


# --------------------------------------------------------------------------
# helpers
# --------------------------------------------------------------------------
def _round_up(x: int, m: int) -> int:
    return ((x + m - 1) // m) * m


def _sublane(dtype) -> int:
    # Second-to-last-dim tiling quantum: 8 (4-byte), 16 (2-byte), 32 (1-byte).
    return max(8, 32 // jnp.dtype(dtype).itemsize)


def _pick_tile(dim: int, cap: int, quantum: int):
    """Return (tile, padded_dim) for one array dimension.

    If `dim` fits under `cap`, use the full dimension as the block (legal even
    when unaligned -> no padding copy at all).  Otherwise pad up to `quantum`
    and use the largest quantum-multiple tile <= cap that divides the padded
    dim (pad is at most quantum-1 elements).
    """
    if dim <= cap:
        return dim, dim
    padded = _round_up(dim, quantum)
    best = quantum
    t = quantum
    while t <= cap:
        if padded % t == 0:
            best = t
        t += quantum
    return best, padded


def _vmem_budget() -> int:
    """Usable VMEM budget for this kernel (physical minus ~25% headroom)."""
    physical = 64 << 20  # conservative fallback = v7x per-TensorCore VMEM
    try:
        cap = getattr(pltpu.get_tpu_info(), "vmem_capacity_bytes", None)
        if cap:
            physical = int(cap)
    except Exception:
        pass
    # v7x (64 MiB) -> ~48 MiB; v5e/v6e (128 MiB) -> ~96 MiB.
    return (physical // 4) * 3


# --------------------------------------------------------------------------
# kernels
# --------------------------------------------------------------------------
def _vl_kernel_single_k(x_ref, w_ref, b_ref, o_ref):
    # Whole K reduction in one tile: no scratch, no branches.
    acc = jnp.dot(x_ref[0], w_ref[0], preferred_element_type=jnp.float32)
    o_ref[0] = (acc + b_ref[0].astype(jnp.float32)).astype(o_ref.dtype)


def _vl_kernel_multi_k_f32(x_ref, w_ref, b_ref, o_ref):
    # k-tiled, f32 output: accumulate directly into the k-resident out tile.
    k = pl.program_id(3)

    @pl.when(k == 0)
    def _init():
        o_ref[0] = jnp.broadcast_to(
            b_ref[0].astype(jnp.float32), o_ref.shape[1:]
        )

    o_ref[0] += jnp.dot(x_ref[0], w_ref[0], preferred_element_type=jnp.float32)


def _vl_kernel_multi_k(x_ref, w_ref, b_ref, o_ref, acc_ref):
    # k-tiled, non-f32 output: f32 VMEM accumulator scratch.
    k = pl.program_id(3)

    @pl.when(k == 0)
    def _init():
        acc_ref[...] = jnp.zeros_like(acc_ref)

    acc_ref[...] += jnp.dot(
        x_ref[0], w_ref[0], preferred_element_type=jnp.float32
    )

    @pl.when(k == pl.num_programs(3) - 1)
    def _finalize():
        o_ref[0] = (acc_ref[...] + b_ref[0].astype(jnp.float32)).astype(
            o_ref.dtype
        )


# --------------------------------------------------------------------------
# wrapper
# --------------------------------------------------------------------------
def vectorized_linear(
    x: jax.Array,
    weight: jax.Array,
    bias: jax.Array,
    *,
    tm: int = 512,
    tn: int = 512,
    tk: int | None = None,
    weight_buffers: int = 3,
) -> jax.Array:
    """x:(E,B,IN) @ weight:(E,IN,OUT) + bias:(E,1,OUT) -> (E,B,OUT).

    tm/tn/tk are tile-size *caps* (tk=None: grow K tile to fill the VMEM
    budget, i.e. usually the full reduction dim).  For bf16 throughput store
    the weight/bias in bf16 upstream; this wrapper never casts the (large)
    weight per call - only the small activation is cast to match it.
    """
    E, B, IN = x.shape
    Ew, INw, OUT = weight.shape
    assert Ew == E and INw == IN and bias.shape == (E, 1, OUT)

    out_dtype = jnp.promote_types(x.dtype, weight.dtype)
    if x.dtype != weight.dtype:
        x = x.astype(weight.dtype)  # cast only the small operand

    x_item = jnp.dtype(x.dtype).itemsize
    w_item = jnp.dtype(weight.dtype).itemsize
    b_item = jnp.dtype(bias.dtype).itemsize
    o_item = jnp.dtype(out_dtype).itemsize

    budget = _vmem_budget()

    # ---- tile selection --------------------------------------------------
    q_m = max(_sublane(x.dtype), _sublane(out_dtype))
    tm, Mp = _pick_tile(B, max(tm, q_m), q_m)
    tn, Np = _pick_tile(OUT, max(tn, 128), 128)

    use_buffered = bool(weight_buffers) and weight_buffers > 2 and hasattr(pl, "Buffered")
    wbuf = weight_buffers if use_buffered else 2

    # Footprint that does not scale with tk (output/bias buffers + f32 acc).
    fixed = 2 * tm * tn * o_item + 2 * tn * b_item + tm * tn * 4
    # Bytes per unit of K: multi-buffered weight tile + double-buffered x tile.
    per_k = wbuf * tn * w_item + 2 * tm * x_item
    cap_k = max(128, ((budget - fixed) // per_k) // 128 * 128)
    if tk is not None:
        cap_k = min(cap_k, max(tk, 128))
    tk, Kp = _pick_tile(IN, cap_k, 128)

    m_tiles, n_tiles, k_tiles = Mp // tm, Np // tn, Kp // tk

    # ---- padding (only when a dim exceeds its cap and is unaligned) -------
    if Mp != B or Kp != IN:
        x = jnp.pad(x, ((0, 0), (0, Mp - B), (0, Kp - IN)))
    if Kp != IN or Np != OUT:
        weight = jnp.pad(weight, ((0, 0), (0, Kp - IN), (0, Np - OUT)))
    if Np != OUT:
        bias = jnp.pad(bias, ((0, 0), (0, 0), (0, Np - OUT)))

    # ---- grid / kernel selection ------------------------------------------
    if k_tiles == 1:
        grid = (E, n_tiles, m_tiles)
        x_index_map = lambda e, n, m: (e, m, 0)
        w_index_map = lambda e, n, m: (e, 0, n)
        b_index_map = lambda e, n, m: (e, 0, n)
        o_index_map = lambda e, n, m: (e, m, n)
        semantics = ("parallel", "parallel", "parallel")
        kernel = _vl_kernel_single_k
        scratch = []
    else:
        grid = (E, n_tiles, m_tiles, k_tiles)
        x_index_map = lambda e, n, m, k: (e, m, k)
        w_index_map = lambda e, n, m, k: (e, k, n)
        b_index_map = lambda e, n, m, k: (e, 0, n)
        o_index_map = lambda e, n, m, k: (e, m, n)
        semantics = ("parallel", "parallel", "parallel", "arbitrary")
        if jnp.dtype(out_dtype) == jnp.dtype(jnp.float32):
            kernel = _vl_kernel_multi_k_f32   # accumulate in k-resident out tile
            scratch = []
        else:
            kernel = _vl_kernel_multi_k
            scratch = [pltpu.VMEM((tm, tn), jnp.float32)]

    footprint = fixed + per_k * tk
    vmem_limit = int(min(max(footprint + (4 << 20), 32 << 20), budget))

    cost = pl.CostEstimate(
        flops=2 * E * Mp * Kp * Np,
        transcendentals=0,
        bytes_accessed=(
            E * n_tiles * Mp * Kp * x_item     # x re-streamed once per n tile
            + E * m_tiles * Kp * Np * w_item   # weight re-streamed once per m tile
            + E * Np * b_item
            + E * Mp * Np * o_item
        ),
    )

    x_spec = pl.BlockSpec((1, tm, tk), x_index_map)
    b_spec = pl.BlockSpec((1, 1, tn), b_index_map)
    out_spec = pl.BlockSpec((1, tm, tn), o_index_map)

    def weight_spec(buffered: bool):
        if buffered:
            try:
                return pl.BlockSpec(
                    (1, tk, tn), w_index_map, pipeline_mode=pl.Buffered(wbuf)
                )
            except TypeError:
                return pl.BlockSpec((1, tk, tn), w_index_map)
        return pl.BlockSpec((1, tk, tn), w_index_map)

    def run(buffered: bool):
        return pl.pallas_call(
            kernel,
            out_shape=jax.ShapeDtypeStruct((E, Mp, Np), out_dtype),
            grid_spec=pltpu.PrefetchScalarGridSpec(
                num_scalar_prefetch=0,
                grid=grid,
                in_specs=[x_spec, weight_spec(buffered), b_spec],
                out_specs=out_spec,
                scratch_shapes=scratch,
            ),
            compiler_params=pltpu.CompilerParams(
                dimension_semantics=semantics,
                vmem_limit_bytes=vmem_limit,
            ),
            cost_estimate=cost,
        )(x, weight, bias)

    if use_buffered:
        try:
            out = run(True)
        except Exception:
            # Deeper weight buffering unsupported by this jax/Mosaic version;
            # retry with default double-buffering.
            out = run(False)
    else:
        out = run(False)

    if Mp != B or Np != OUT:
        out = out[:, :B, :OUT]
    return out


# --------------------------------------------------------------------------
# parameter init (mirrors VectorizedLinear.reset_parameters closely enough
# for a deterministic demo)
# --------------------------------------------------------------------------
def init_params(key, in_features: int, out_features: int, ensemble_size: int):
    kw, kb = jax.random.split(key)
    bound = 1.0 / math.sqrt(in_features) if in_features > 0 else 0.0
    weight = jax.random.uniform(
        kw, (ensemble_size, in_features, out_features),
        minval=-bound, maxval=bound, dtype=jnp.float32)
    bias = jax.random.uniform(
        kb, (ensemble_size, 1, out_features),
        minval=-bound, maxval=bound, dtype=jnp.float32)
    return weight, bias


def _ref(x, w, b):
    return jnp.einsum(
        "ebi,eio->ebo",
        x.astype(jnp.float32), w.astype(jnp.float32),
        precision=jax.lax.Precision.HIGHEST,
    ) + b.astype(jnp.float32)


if __name__ == "__main__":
    key = jax.random.PRNGKey(0)

    # Case 1: small, unaligned shapes -> full-dim blocks, no padding, fast path.
    E, B, IN, OUT = 4, 10, 96, 48
    k1, k2, key = jax.random.split(key, 3)
    x = jax.random.normal(k1, (E, B, IN), dtype=jnp.float32)
    w, b = init_params(k2, IN, OUT, E)
    out = jax.block_until_ready(vectorized_linear(x, w, b))
    assert out.shape == (E, B, OUT)
    assert jnp.allclose(out, _ref(x, w, b), atol=1e-4, rtol=1e-4), "case 1 mismatch"

    # Case 2: default tiles -> full-K fast path (k_tiles == 1, no scratch).
    E, B, IN, OUT = 2, 16, 512, 256
    k1, k2, key = jax.random.split(key, 3)
    x = jax.random.normal(k1, (E, B, IN), dtype=jnp.float32)
    w, b = init_params(k2, IN, OUT, E)
    out = jax.block_until_ready(vectorized_linear(x, w, b))
    assert out.shape == (E, B, OUT)
    assert jnp.allclose(out, _ref(x, w, b), atol=1e-3, rtol=1e-3), "case 2 mismatch"

    # Case 3: force tk=128 -> k-tiled path, f32 output accumulates in place.
    out = jax.block_until_ready(vectorized_linear(x, w, b, tk=128))
    assert out.shape == (E, B, OUT)
    assert jnp.allclose(out, _ref(x, w, b), atol=1e-3, rtol=1e-3), "case 3 mismatch"

    # Case 4: weights stored in bf16 upstream (no per-call weight cast inside
    # the wrapper); bf16 output -> k-tiled scratch-accumulator path.
    x16 = x.astype(jnp.bfloat16)
    w16 = w.astype(jnp.bfloat16)
    b16 = b.astype(jnp.bfloat16)
    out16 = jax.block_until_ready(vectorized_linear(x16, w16, b16, tk=128))
    assert out16.shape == (E, B, OUT) and out16.dtype == jnp.bfloat16
    assert jnp.allclose(out16.astype(jnp.float32), _ref(x, w, b),
                        atol=5e-2, rtol=5e-2), "case 4 mismatch"

    print("KERNEL_OK")
</pallas_src>

<mosaic_0001>
module attributes {stable_mosaic.version = 11 : i64} {
  func.func @_vl_kernel_single_k(%arg0: i32, %arg1: i32, %arg2: i32, %arg3: memref<1x10x96xf32, #tpu.memory_space<vmem>>, %arg4: memref<1x96x48xf32, #tpu.memory_space<vmem>>, %arg5: memref<1x1x48xf32, #tpu.memory_space<vmem>>, %arg6: memref<1x10x48xf32, #tpu.memory_space<vmem>>) attributes {dimension_semantics = [#tpu.dimension_semantics<parallel>, #tpu.dimension_semantics<parallel>, #tpu.dimension_semantics<parallel>], iteration_bounds = array<i64: 4, 1, 1>, scalar_prefetch = 0 : i64, scratch_operands = 0 : i64, tpu.core_type = #tpu.core_type<tc>, window_params = [{transform_indices = @transform_0, window_bounds = array<i64: 1, 10, 96>}, {transform_indices = @transform_1, window_bounds = array<i64: 1, 96, 48>}, {transform_indices = @transform_2, window_bounds = array<i64: 1, 1, 48>}, {transform_indices = @transform_3, window_bounds = array<i64: 1, 10, 48>}]} {
    %c0 = arith.constant 0 : index
    %c0_0 = arith.constant 0 : index
    %c0_1 = arith.constant 0 : index
    %0 = vector.load %arg3[%c0, %c0_0, %c0_1] : memref<1x10x96xf32, #tpu.memory_space<vmem>>, vector<1x10x96xf32>
    %1 = vector.shape_cast %0 : vector<1x10x96xf32> to vector<10x96xf32>
    %c0_2 = arith.constant 0 : index
    %c0_3 = arith.constant 0 : index
    %c0_4 = arith.constant 0 : index
    %2 = vector.load %arg4[%c0_2, %c0_3, %c0_4] : memref<1x96x48xf32, #tpu.memory_space<vmem>>, vector<1x96x48xf32>
    %3 = vector.shape_cast %2 : vector<1x96x48xf32> to vector<96x48xf32>
    %cst = arith.constant dense<0.000000e+00> : vector<10x48xf32>
    %4 = tpu.matmul %1, %3, %cst {dimension_numbers = #tpu.dot_dimension_numbers<[1], [0], [0], [1], [0, 0, 1, 1], [], []>} : vector<10x96xf32>, vector<96x48xf32>, vector<10x48xf32> -> vector<10x48xf32>
    %c0_5 = arith.constant 0 : index
    %c0_6 = arith.constant 0 : index
    %c0_7 = arith.constant 0 : index
    %5 = vector.load %arg5[%c0_5, %c0_6, %c0_7] : memref<1x1x48xf32, #tpu.memory_space<vmem>>, vector<1x1x48xf32>
    %6 = vector.shape_cast %5 : vector<1x1x48xf32> to vector<1x48xf32>
    %7 = vector.broadcast %6 : vector<1x48xf32> to vector<10x48xf32>
    %8 = arith.addf %4, %7 : vector<10x48xf32>
    %c0_8 = arith.constant 0 : index
    %c0_9 = arith.constant 0 : index
    %c0_10 = arith.constant 0 : index
    %9 = vector.load %arg6[%c0_8, %c0_9, %c0_10] : memref<1x10x48xf32, #tpu.memory_space<vmem>>, vector<1x10x48xf32>
    %10 = vector.shape_cast %9 : vector<1x10x48xf32> to vector<10x48xf32>
    %11 = vector.shape_cast %8 : vector<10x48xf32> to vector<1x10x48xf32>
    tpu.vector_store %arg6[%c0_8, %c0_9, %c0_10], %11 {strides = array<i32>} : memref<1x10x48xf32, #tpu.memory_space<vmem>>, vector<1x10x48xf32>,
    return
  }
  func.func @transform_0(%arg0: i32, %arg1: i32, %arg2: i32) -> (i32, i32, i32) {
    %c0_i32 = arith.constant 0 : i32
    %c0_i32_0 = arith.constant 0 : i32
    return %arg0, %arg2, %c0_i32 : i32, i32, i32
  }
  func.func @transform_1(%arg0: i32, %arg1: i32, %arg2: i32) -> (i32, i32, i32) {
    %c0_i32 = arith.constant 0 : i32
    %c0_i32_0 = arith.constant 0 : i32
    return %arg0, %c0_i32, %arg1 : i32, i32, i32
  }
  func.func @transform_2(%arg0: i32, %arg1: i32, %arg2: i32) -> (i32, i32, i32) {
    %c0_i32 = arith.constant 0 : i32
    %c0_i32_0 = arith.constant 0 : i32
    return %arg0, %c0_i32, %arg1 : i32, i32, i32
  }
  func.func @transform_3(%arg0: i32, %arg1: i32, %arg2: i32) -> (i32, i32, i32) {
    %c0_i32 = arith.constant 0 : i32
    return %arg0, %arg2, %arg1 : i32, i32, i32
  }
}

</mosaic_0001>

<bundles_post_ra>
// kernel: tpu_custom_call.1
= control target key start
LH: loop header
LB: loop body
LE: loop exit
PB: predicated region body
PF: predicated region fallthrough
CT: control target
= control target key end

     0   :  { %s561_s12 = smov 0   ;;  %s563_s13 = smov 0   ;;  %s624_s0 = inlined_call_operand.vmem [shape: f32[4,10,96], index: 0, kind: input, shape index: {}]   ;;  %s625_s1 = inlined_call_operand.vmem [shape: f32[4,96,48], index: 1, kind: input, shape index: {}]   ;;  %s626_s2 = inlined_call_operand.vmem [shape: f32[4,1,48], index: 2, kind: input, shape index: {}]   ;;  %s627_s3 = inlined_call_operand.vmem [shape: f32[4,10,48], index: 3, kind: output, shape index: {}]  }
   0x1   :  { %s565_s14 = smov 0  }
   0x2 LB: > { %s32_s15 = sadd.s32 1, %s535_s13  ;;  %p467_p0 = scmp.ge.s32.totalorder %s539_s14, 1  ;;  %s539_s14 = sphi %s565_s14, %s13_s14   ;;  %s535_s13 = sphi %s563_s13, %s629_s13   ;;  %s531_s12 = sphi %s561_s12, %s628_s12  }
   0x3   : > { %p34_p1 = scmp.ge.s32.totalorder %s32_s15, 4  ;;  %p195_p2 = scmp.lt.s32.totalorder %s539_s14, 5 }
   0x5   : > { %s631_s15 = smov (%p34_p1, %s32_s15), 0  ;;  %p196_p3 = pnand %p467_p0, %p195_p2 }
   0x6   : > { %p245_p4 = scmp.lt.s32.totalorder (!%p196_p3), %s531_s12, 3 }
   0x7   : > { %199 = sbr.rel (%p196_p3) target bundleno = 170 (0xaa), region = 32 }
   0xc   : > { %s633_s12 = smov (!%p245_p4, %s531_s12), 3  ;;  %vm299_vm0 = vcmask 785408   ;;  %vm329_vm1 = vcmask 392192   ;;  %vm331_vm2 = vcmask 386048  }
   0xd   : > { %s491_s16 = smul.u32 96, %s633_s12  ;;  %s267_s22 = scalar_lea.vmem %s626_s2, %s633_s12 }
   0xe   : > { %s477_s23 = sshll.u32 %s633_s12, 4  ;;  %v516_v14 = vld [vmem:[%s267_s22] ss:$0 sm:$0xff] }
   0xf   : > { %s585_s19 = scalar_lea.vmem %s625_s1, %s491_s16  ;;  %s252_s26 = scalar_lea.vmem %s624_s0, %s477_s23 }
  0x10   : > { %v294_v0 = vld [vmem:[%s585_s19 + $0x58] sm:$0xff]  ;;  %v293_v1 = vld [vmem:[%s585_s19 + $0x50] sm:$0xff]  ;;  %v292_v2 = vld [vmem:[%s585_s19 + $0x48] sm:$0xff]  ;;  %s279_s4 = scalar_lea.vmem %s627_s3, %s477_s23 }
  0x11   : > { %310 = vmatpush.msra.mxu0 %v294_v0  ;;  %479 = vmatpush.msra.mxu1 %v294_v0  ;;  %v291_v3 = vld [vmem:[%s585_s19 + $0x40] sm:$0xff]  ;;  %v290_v4 = vld [vmem:[%s585_s19 + $0x38] sm:$0xff]  ;;  %v289_v5 = vld [vmem:[%s585_s19 + $0x30] sm:$0xff] }
  0x12   : > { %v288_v6 = vld [vmem:[%s585_s19 + $0x28] sm:$0xff]  ;;  %v287_v7 = vld [vmem:[%s585_s19 + $0x20] sm:$0xff]  ;;  %v286_v8 = vld [vmem:[%s585_s19 + $0x18] sm:$0xff] }
  0x13   : > { %311 = vmatpush.msra.mxu0 %v293_v1  ;;  %480 = vmatpush.msra.mxu1 %v293_v1  ;;  %v285_v9 = vld [vmem:[%s585_s19 + $0x10] sm:$0xff]  ;;  %v284_v10 = vld [vmem:[%s585_s19 + $0x8] sm:$0xff]  ;;  %v283_v11 = vld [vmem:[%s585_s19] sm:$0xff] }
  0x14   : > { %v281_v12 = vld [vmem:[%s252_s26] sm:$0xff]  ;;  %v282_v13 = vld [vmem:[%s252_s26 + $0x8] sm:$0x3] }
  0x15   : > { %312 = vmatpush.msra.mxu0 %v292_v2  ;;  %481 = vmatpush.msra.mxu1 %v292_v2 }
  0x17   : > { %313 = vmatpush.msra.mxu0 %v291_v3  ;;  %482 = vmatpush.msra.mxu1 %v291_v3 }
  0x19   : > { %314 = vmatpush.msra.mxu0 %v290_v4  ;;  %483 = vmatpush.msra.mxu1 %v290_v4 }
  0x1b   : > { %315 = vmatpush.msra.mxu0 %v289_v5  ;;  %484 = vmatpush.msra.mxu1 %v289_v5 }
  0x1d   : > { %316 = vmatpush.msra.mxu0 %v288_v6  ;;  %485 = vmatpush.msra.mxu1 %v288_v6 }
  0x1f   : > { %317 = vmatpush.msra.mxu0 %v287_v7  ;;  %486 = vmatpush.msra.mxu1 %v287_v7 }
  0x21   : > { %318 = vmatpush.msra.mxu0 %v286_v8  ;;  %487 = vmatpush.msra.mxu1 %v286_v8 }
  0x23   : > { %319 = vmatpush.msra.mxu0 %v285_v9  ;;  %488 = vmatpush.msra.mxu1 %v285_v9 }
  0x25   : > { %320 = vmatpush.msra.mxu0 %v284_v10  ;;  %489 = vmatpush.msra.mxu1 %v284_v10 }
  0x27   : > { %321 = vmatpush.msra.mxu0 %v283_v11  ;;  %490 = vmatpush.msra.mxu1 %v283_v11 }
  0x28   : > { %473 = vmatmul.msk.f32.vlgmr.msra.gmra.mxu0 %vm299_vm0, %v281_v12  ;;  %474 = vmatmul.msk.f32.vlgmr.msra.gmra.mxu1 %vm299_vm0, %v282_v13 }
  0xa5   : > { %v323_v15 = vpop.f32.mrf.mxu0  ;;  %v326_v16 = vpop.f32.mrf.mxu1 }
  0xa6   : > { %v324_v17 = vadd.f32 %v516_v14, %v323_v15  ;;  %v327_v18 = vadd.f32 %v516_v14, %v326_v16 }
  0xa8   : > { %330 = vst.msk [vmem:[%s279_s4] sm:$0xff] %vm329_vm1, %v324_v17 }
  0xa9   : > { %332 = vst.msk [vmem:[%s279_s4 + $0x8] sm:$0x3] %vm331_vm2, %v327_v18 }
  0xaa PF: > { %s13_s14 = sadd.s32 1, %s539_s14   ;;  %s628_s12 = smov %s535_s13 }
  0xab   : > { %p10_p5 = scmp.ge.s32.totalorder %s13_s14, 6   ;;  %s629_s13 = smov %s631_s15 }
  0xad   :  { %12 = sbr.rel (!%p10_p5) target bundleno = 2 (0x2), region = 68 }

</bundles_post_ra>
